<compile_context>
chip_gen: v7x
topology: tpu7x:2x2x1
jax: 0.10.0
libtpu: 0.0.40
codegen_flags: <defaults>
</compile_context>

<pallas_src>
import functools
import math

import jax
import jax.numpy as jnp
from jax.experimental import pallas as pl
from jax.experimental.pallas import tpu as pltpu

_EPS = 1e-5


def _vmem_capacity_bytes():
    """Per-core VMEM (v5e/v6e: 128 MiB, v7x: 64 MiB); conservative fallback."""
    try:
        return int(pltpu.get_tpu_info().vmem_capacity_bytes)
    except Exception:
        return 64 * 1024 * 1024


def _pick_t_tile(t_out, kc, c_out, in_bytes, out_bytes, vmem_cap):
    """Largest time tile (multiple of 256) whose double-buffered working set
    fits in ~half of this generation's VMEM (rest = compiler-scratch headroom)."""
    if t_out <= 512:
        return t_out
    budget = max(16 << 20, vmem_cap // 2) - 2 * kc * c_out * in_bytes
    per_row = 2 * kc * in_bytes + 2 * c_out * out_bytes + 6 * c_out * 4
    t = max(256, min(2048, (budget // per_row) // 256 * 256))
    return t_out if t >= t_out else int(t)


# ---------------------------------------------------------------------------
# Kernels
# ---------------------------------------------------------------------------

def _conv_block_kernel(p_ref, w_ref, g_ref, b_ref, o_ref, *, norm, out_nct):
    """Fused Conv1d (matmul over im2col patches) + norm + exact GELU.

    p_ref: (t_tile, K*C_in)   w_ref: (K*C_in, C_out)   g_ref/b_ref: (1, C_out)
    o_ref: (t_tile, C_out) NTC, or (C_out, t_tile) when out_nct (final layer).
    """
    y = jnp.dot(p_ref[...], w_ref[...], preferred_element_type=jnp.float32)

    if norm == "layer":
        # TransposeLast -> Fp32LayerNorm(C_out) -> TransposeLast: per-timestep
        # normalization over channels (lane axis), strictly in f32.
        mean = jnp.mean(y, axis=-1, keepdims=True)
        var = jnp.mean(jnp.square(y - mean), axis=-1, keepdims=True)
        y = (y - mean) * jax.lax.rsqrt(var + _EPS)
        y = y * g_ref[...] + b_ref[...]
    elif norm == "affine":
        # Pass 2 of the two-pass GroupNorm: per-(batch, channel) scale/shift
        # (mean/var/gamma/beta/eps already folded in by the wrapper).
        y = y * g_ref[...] + b_ref[...]

    # torch.nn.GELU() default = exact erf GELU.
    # TODO(synk): switch to approximate=True (tanh on the EUP slot) only if
    # profiling shows the VPU as the saturating slot and tolerance allows.
    y = jax.nn.gelu(y, approximate=False)
    if out_nct:
        y = y.T                 # emit NCT directly; avoids an XLA transpose pass
    o_ref[...] = y.astype(o_ref.dtype)


def _group_stats_kernel(p_ref, w_ref, sum_ref, sq_ref, *, t_out, t_tile):
    """Pass 1 of GroupNorm: per-channel sum / sum-sq over time, accumulated
    across the 'arbitrary' time grid axis into (1, C_out) f32 residents."""
    @pl.when(pl.program_id(1) == 0)
    def _():
        sum_ref[...] = jnp.zeros_like(sum_ref)
        sq_ref[...] = jnp.zeros_like(sq_ref)

    y = jnp.dot(p_ref[...], w_ref[...], preferred_element_type=jnp.float32)
    if t_out % t_tile != 0:
        # Ragged edge block: mask rows past t_out so undefined edge padding
        # never feeds the statistics.
        rows = pl.program_id(1) * t_tile + jax.lax.broadcasted_iota(
            jnp.int32, y.shape, 0)
        y = jnp.where(rows < t_out, y, 0.0)
    sum_ref[...] += jnp.sum(y, axis=0, keepdims=True)
    sq_ref[...] += jnp.sum(jnp.square(y), axis=0, keepdims=True)


# ---------------------------------------------------------------------------
# pallas_call wrappers
# ---------------------------------------------------------------------------

def _conv_block(patches, w_flat, gamma, beta, *, t_out, norm, out_nct,
                out_dtype, t_tile, vmem_limit):
    """One fused conv block.  patches: (B, T_out, K*C_in) in the MXU dtype,
    w_flat: (K*C_in, C_out), gamma/beta: (B, 1, C_out) f32."""
    B, t_rows, KC = patches.shape
    assert t_rows == t_out
    C_out = w_flat.shape[-1]
    nt = pl.cdiv(t_out, t_tile)

    if out_nct:
        out_shape = jax.ShapeDtypeStruct((B, C_out, t_out), out_dtype)
        out_spec = pl.BlockSpec((None, C_out, t_tile), lambda b, t: (b, 0, t))
    else:
        out_shape = jax.ShapeDtypeStruct((B, t_out, C_out), out_dtype)
        out_spec = pl.BlockSpec((None, t_tile, C_out), lambda b, t: (b, t, 0))

    in_b = patches.dtype.itemsize
    out_b = jnp.dtype(out_dtype).itemsize
    cost = pl.CostEstimate(
        flops=2 * B * t_out * KC * C_out,
        transcendentals=B * t_out * C_out,                     # erf in GELU
        bytes_accessed=in_b * (B * t_out * KC + KC * C_out)
        + out_b * B * t_out * C_out + 8 * B * C_out,
    )

    kernel = functools.partial(_conv_block_kernel, norm=norm, out_nct=out_nct)
    # TODO(synk): single-buffer w/gamma/beta (pipeline_mode=pl.Buffered(1)) once
    # verified on this JAX build; their index maps are grid-invariant.
    return pl.pallas_call(
        kernel,
        out_shape=out_shape,
        grid=(B, nt),
        in_specs=[
            pl.BlockSpec((None, t_tile, KC), lambda b, t: (b, t, 0)),
            pl.BlockSpec((KC, C_out), lambda b, t: (0, 0)),
            pl.BlockSpec((None, 1, C_out), lambda b, t: (b, 0, 0)),
            pl.BlockSpec((None, 1, C_out), lambda b, t: (b, 0, 0)),
        ],
        out_specs=out_spec,
        compiler_params=pltpu.CompilerParams(
            dimension_semantics=("parallel", "parallel"),
            vmem_limit_bytes=vmem_limit),
        cost_estimate=cost,
    )(patches, w_flat, gamma, beta)


def _group_stats(patches, w_flat, *, t_out, t_tile, vmem_limit):
    """Pass 1 of the two-pass GroupNorm: per-(batch, channel) sum / sum-sq."""
    B, _, KC = patches.shape
    C_out = w_flat.shape[-1]
    nt = pl.cdiv(t_out, t_tile)
    kernel = functools.partial(_group_stats_kernel, t_out=t_out, t_tile=t_tile)
    acc_spec = pl.BlockSpec((None, 1, C_out), lambda b, t: (b, 0, 0))
    return pl.pallas_call(
        kernel,
        out_shape=(jax.ShapeDtypeStruct((B, 1, C_out), jnp.float32),
                   jax.ShapeDtypeStruct((B, 1, C_out), jnp.float32)),
        grid=(B, nt),
        in_specs=[
            pl.BlockSpec((None, t_tile, KC), lambda b, t: (b, t, 0)),
            pl.BlockSpec((KC, C_out), lambda b, t: (0, 0)),
        ],
        out_specs=(acc_spec, acc_spec),
        compiler_params=pltpu.CompilerParams(
            dimension_semantics=("parallel", "arbitrary"),
            vmem_limit_bytes=vmem_limit),
        cost_estimate=pl.CostEstimate(
            flops=2 * B * t_out * KC * C_out + 3 * B * t_out * C_out,
            transcendentals=0,
            bytes_accessed=patches.dtype.itemsize * (B * t_out * KC + KC * C_out)
            + 8 * B * C_out),
    )(patches, w_flat)


# ---------------------------------------------------------------------------
# Host-side model code
# ---------------------------------------------------------------------------

def _im2col(h, t_valid, K, stride):
    """h: (B, T, C_in) NTC (first t_valid rows valid) -> (B, T_out, K*C_in).

    Patch feature index = k*C_in + c, matching the pre-flattened weights.
    K contiguous strided slices done once per layer in XLA, so the Pallas
    kernel never issues strided sublane reads.
    TODO(synk): fuse the im2col into the kernel (haloed raw-activation block)
    to remove the K-fold HBM materialization, which matters most on v5e/v6e.
    """
    T_out = (t_valid - K) // stride + 1
    span = (T_out - 1) * stride + 1
    cols = [h[:, k:k + span:stride, :] for k in range(K)]
    return jnp.concatenate(cols, axis=-1), T_out


def init_params(key, conv_layers, mode="default"):
    """Deterministic parameter init mirroring the torch module's __init__
    (conv_bias=False, kaiming_normal_ weights, affine norm params at 1/0)."""
    assert mode in {"default", "layer_norm"}
    # TODO(synk): conv_bias=True (per-channel bias add) not implemented; the
    # torch module's default is bias=False.
    params = []
    in_d = 1
    for i, (dim, k, stride) in enumerate(conv_layers):
        key, wkey = jax.random.split(key)
        std = math.sqrt(2.0 / (in_d * k))      # kaiming_normal_, fan_in, a=0
        w = std * jax.random.normal(wkey, (dim, in_d, k), dtype=jnp.float32)
        # Pre-flatten the matmul layout ONCE: (C_out, C_in, K) -> (K*C_in, C_out)
        w_flat = jnp.transpose(w, (2, 1, 0)).reshape(k * in_d, dim)
        params.append(dict(
            w_flat=w_flat, kernel=k, stride=stride, c_in=in_d, c_out=dim,
            gamma=jnp.ones((1, dim), jnp.float32),
            beta=jnp.zeros((1, dim), jnp.float32),
            norm=("group" if (mode == "default" and i == 0)
                  else ("layer" if mode == "layer_norm" else None)),
        ))
        in_d = dim
    return params


def conv_feature_extraction(x, params, *, mxu_dtype=jnp.bfloat16, nct_output=True):
    """Forward pass.  x: (B, T) -> (B, C_last, T_out), like the torch module.

    mxu_dtype=jnp.bfloat16 (default) runs the conv matmuls with bf16 MXU
    operands / f32 accumulation (norm + GELU strictly f32); pass jnp.float32
    for bit-closer numerics.  nct_output=False emits (B, T_out, C_last) and
    skips the in-kernel final transpose if the consumer is time-major.
    """
    vmem_cap = _vmem_capacity_bytes()
    vmem_limit = int(0.75 * vmem_cap)
    B = x.shape[0]
    # TODO(synk): Dropout(p=0.0) is the identity at inference; no op emitted.
    # Cast BEFORE im2col so the K-expanded patches (the largest per-layer
    # tensor) are materialized and streamed in the narrow MXU dtype.
    h = x.astype(mxu_dtype)[:, :, None]                       # NTC (B, T, 1)
    t_valid = x.shape[1]
    n_layers = len(params)
    for li, p in enumerate(params):
        K, C_in, C_out = p["kernel"], p["c_in"], p["c_out"]
        patches, t_valid = _im2col(h, t_valid, K, p["stride"])
        last = li == n_layers - 1
        out_dtype = jnp.float32 if last else mxu_dtype        # torch output is f32
        w = p["w_flat"].astype(mxu_dtype)
        t_tile = _pick_t_tile(t_valid, K * C_in, C_out,
                              jnp.dtype(mxu_dtype).itemsize,
                              jnp.dtype(out_dtype).itemsize, vmem_cap)
        if p["norm"] == "group":
            # Two-pass, time-tiled Fp32GroupNorm (num_groups == num_channels):
            # pass 1 accumulates sum/sum-sq; stats are folded into per-(batch,
            # channel) scale/shift; pass 2 applies them fused with conv + GELU.
            s_sum, s_sq = _group_stats(patches, w, t_out=t_valid, t_tile=t_tile,
                                       vmem_limit=vmem_limit)
            mean = s_sum[:, 0, :] / t_valid                              # (B, C)
            var = jnp.maximum(s_sq[:, 0, :] / t_valid - jnp.square(mean), 0.0)
            scale = p["gamma"][0] * jax.lax.rsqrt(var + _EPS)            # (B, C)
            g = scale[:, None, :]
            b = (p["beta"][0] - mean * scale)[:, None, :]
            norm = "affine"
        else:
            g = jnp.broadcast_to(p["gamma"][None], (B, 1, C_out))
            b = jnp.broadcast_to(p["beta"][None], (B, 1, C_out))
            norm = p["norm"]                                  # "layer" or None
        h = _conv_block(patches, w, g, b, t_out=t_valid, norm=norm,
                        out_nct=last and nct_output, out_dtype=out_dtype,
                        t_tile=t_tile, vmem_limit=vmem_limit)
        # inner layers: h is (B, T_out, C) NTC in mxu_dtype; last: NCT f32.
    return h


def _reference(x, params):
    """Pure-JAX f32 reference matching the torch module's forward."""
    h = x.astype(jnp.float32)[:, None, :]                     # (B, 1, T) NCT
    for p in params:
        K, Cin, Cout = p["kernel"], p["c_in"], p["c_out"]
        w = jnp.transpose(p["w_flat"].reshape(K, Cin, Cout), (2, 1, 0))
        h = jax.lax.conv_general_dilated(
            h, w, (p["stride"],), "VALID",
            dimension_numbers=("NCH", "OIH", "NCH"))
        g = p["gamma"].reshape(1, -1, 1)
        b = p["beta"].reshape(1, -1, 1)
        if p["norm"] == "group":
            mean = h.mean(axis=2, keepdims=True)
            var = jnp.square(h - mean).mean(axis=2, keepdims=True)
            h = (h - mean) * jax.lax.rsqrt(var + _EPS) * g + b
        elif p["norm"] == "layer":
            mean = h.mean(axis=1, keepdims=True)
            var = jnp.square(h - mean).mean(axis=1, keepdims=True)
            h = (h - mean) * jax.lax.rsqrt(var + _EPS) * g + b
        h = jax.nn.gelu(h, approximate=False)
    return h


if __name__ == "__main__":
    key = jax.random.PRNGKey(0)
    pkey, xkey = jax.random.split(key)

    # small synthetic config: two conv layers (dim, kernel, stride)
    conv_layers = [(32, 4, 2), (32, 4, 2)]
    x = jax.random.normal(xkey, (2, 64), dtype=jnp.float32)   # (B, T)

    for mode in ("default", "layer_norm"):
        params = init_params(pkey, conv_layers, mode=mode)
        ref = _reference(x, params)

        # f32 MXU path: tight check against the pure-JAX reference.
        out_f32 = conv_feature_extraction(x, params, mxu_dtype=jnp.float32)
        jax.block_until_ready(out_f32)
        assert out_f32.shape == (2, 32, 14), out_f32.shape    # (B, C, T_out) NCT
        assert bool(jnp.all(jnp.isfinite(out_f32)))
        assert bool(jnp.allclose(out_f32, ref, atol=1e-3, rtol=1e-3)), f"{mode} f32"

        # bf16 MXU path (the default): looser tolerance, still vs the f32 ref.
        out_bf16 = conv_feature_extraction(x, params)
        jax.block_until_ready(out_bf16)
        assert out_bf16.shape == (2, 32, 14), out_bf16.shape
        assert bool(jnp.all(jnp.isfinite(out_bf16)))
        assert bool(jnp.allclose(out_bf16, ref, atol=1e-1, rtol=5e-2)), f"{mode} bf16"

    print("KERNEL_OK")
</pallas_src>

<mosaic_0001>
module attributes {stable_mosaic.version = 11 : i64} {
  func.func @_group_stats_kernel(%arg0: i32, %arg1: i32, %arg2: memref<1x31x4xf32, #tpu.memory_space<vmem>>, %arg3: memref<4x32xf32, #tpu.memory_space<vmem>>, %arg4: memref<1x1x32xf32, #tpu.memory_space<vmem>>, %arg5: memref<1x1x32xf32, #tpu.memory_space<vmem>>) attributes {dimension_semantics = [#tpu.dimension_semantics<parallel>, #tpu.dimension_semantics<arbitrary>], iteration_bounds = array<i64: 2, 1>, scalar_prefetch = 0 : i64, scratch_operands = 0 : i64, tpu.core_type = #tpu.core_type<tc>, window_params = [{transform_indices = @transform_0, window_bounds = array<i64: 1, 31, 4>}, {pipeline_mode = #tpu.pipeline_mode<synchronous>, transform_indices = @transform_1, window_bounds = array<i64: 4, 32>}, {transform_indices = @transform_2, window_bounds = array<i64: 1, 1, 32>}, {transform_indices = @transform_3, window_bounds = array<i64: 1, 1, 32>}]} {
    %c0_i32 = arith.constant 0 : i32
    %0 = arith.cmpi eq, %arg1, %c0_i32 : i32
    %1 = arith.extui %0 : i1 to i32
    %c0_i32_0 = arith.constant 0 : i32
    %2 = arith.cmpi ne, %1, %c0_i32_0 : i32
    scf.if %2 {
      %cst_19 = arith.constant 0.000000e+00 : f32
      %24 = vector.broadcast %cst_19 : f32 to vector<1x32xf32>
      %c0_20 = arith.constant 0 : index
      %c0_21 = arith.constant 0 : index
      %c0_22 = arith.constant 0 : index
      %25 = vector.load %arg4[%c0_20, %c0_21, %c0_22] : memref<1x1x32xf32, #tpu.memory_space<vmem>>, vector<1x1x32xf32>
      %26 = vector.shape_cast %25 : vector<1x1x32xf32> to vector<1x32xf32>
      %27 = vector.shape_cast %24 : vector<1x32xf32> to vector<1x1x32xf32>
      tpu.vector_store %arg4[%c0_20, %c0_21, %c0_22], %27 {strides = array<i32>} : memref<1x1x32xf32, #tpu.memory_space<vmem>>, vector<1x1x32xf32>,
      %cst_23 = arith.constant 0.000000e+00 : f32
      %28 = vector.broadcast %cst_23 : f32 to vector<1x32xf32>
      %c0_24 = arith.constant 0 : index
      %c0_25 = arith.constant 0 : index
      %c0_26 = arith.constant 0 : index
      %29 = vector.load %arg5[%c0_24, %c0_25, %c0_26] : memref<1x1x32xf32, #tpu.memory_space<vmem>>, vector<1x1x32xf32>
      %30 = vector.shape_cast %29 : vector<1x1x32xf32> to vector<1x32xf32>
      %31 = vector.shape_cast %28 : vector<1x32xf32> to vector<1x1x32xf32>
      tpu.vector_store %arg5[%c0_24, %c0_25, %c0_26], %31 {strides = array<i32>} : memref<1x1x32xf32, #tpu.memory_space<vmem>>, vector<1x1x32xf32>,
    } else {
    }
    %c0 = arith.constant 0 : index
    %c0_1 = arith.constant 0 : index
    %c0_2 = arith.constant 0 : index
    %3 = vector.load %arg2[%c0, %c0_1, %c0_2] : memref<1x31x4xf32, #tpu.memory_space<vmem>>, vector<1x31x4xf32>
    %4 = vector.shape_cast %3 : vector<1x31x4xf32> to vector<31x4xf32>
    %c0_3 = arith.constant 0 : index
    %c0_4 = arith.constant 0 : index
    %5 = vector.load %arg3[%c0_3, %c0_4] : memref<4x32xf32, #tpu.memory_space<vmem>>, vector<4x32xf32>
    %cst = arith.constant dense<0.000000e+00> : vector<31x32xf32>
    %6 = tpu.matmul %4, %5, %cst {dimension_numbers = #tpu.dot_dimension_numbers<[1], [0], [0], [1], [0, 0, 1, 1], [], []>} : vector<31x4xf32>, vector<4x32xf32>, vector<31x32xf32> -> vector<31x32xf32>
    %c0_5 = arith.constant 0 : index
    %c0_6 = arith.constant 0 : index
    %c0_7 = arith.constant 0 : index
    %7 = vector.load %arg4[%c0_5, %c0_6, %c0_7] : memref<1x1x32xf32, #tpu.memory_space<vmem>>, vector<1x1x32xf32>
    %8 = vector.shape_cast %7 : vector<1x1x32xf32> to vector<1x32xf32>
    %cst_8 = arith.constant dense<0.000000e+00> : vector<32xf32>
    %9 = vector.multi_reduction <add>, %6, %cst_8 [0] : vector<31x32xf32> to vector<32xf32>
    %10 = vector.shape_cast %9 : vector<32xf32> to vector<1x32xf32>
    %11 = arith.addf %8, %10 : vector<1x32xf32>
    %c0_9 = arith.constant 0 : index
    %c0_10 = arith.constant 0 : index
    %c0_11 = arith.constant 0 : index
    %12 = vector.load %arg4[%c0_9, %c0_10, %c0_11] : memref<1x1x32xf32, #tpu.memory_space<vmem>>, vector<1x1x32xf32>
    %13 = vector.shape_cast %12 : vector<1x1x32xf32> to vector<1x32xf32>
    %14 = vector.shape_cast %11 : vector<1x32xf32> to vector<1x1x32xf32>
    tpu.vector_store %arg4[%c0_9, %c0_10, %c0_11], %14 {strides = array<i32>} : memref<1x1x32xf32, #tpu.memory_space<vmem>>, vector<1x1x32xf32>,
    %c0_12 = arith.constant 0 : index
    %c0_13 = arith.constant 0 : index
    %c0_14 = arith.constant 0 : index
    %15 = vector.load %arg5[%c0_12, %c0_13, %c0_14] : memref<1x1x32xf32, #tpu.memory_space<vmem>>, vector<1x1x32xf32>
    %16 = vector.shape_cast %15 : vector<1x1x32xf32> to vector<1x32xf32>
    %17 = arith.mulf %6, %6 : vector<31x32xf32>
    %cst_15 = arith.constant dense<0.000000e+00> : vector<32xf32>
    %18 = vector.multi_reduction <add>, %17, %cst_15 [0] : vector<31x32xf32> to vector<32xf32>
    %19 = vector.shape_cast %18 : vector<32xf32> to vector<1x32xf32>
    %20 = arith.addf %16, %19 : vector<1x32xf32>
    %c0_16 = arith.constant 0 : index
    %c0_17 = arith.constant 0 : index
    %c0_18 = arith.constant 0 : index
    %21 = vector.load %arg5[%c0_16, %c0_17, %c0_18] : memref<1x1x32xf32, #tpu.memory_space<vmem>>, vector<1x1x32xf32>
    %22 = vector.shape_cast %21 : vector<1x1x32xf32> to vector<1x32xf32>
    %23 = vector.shape_cast %20 : vector<1x32xf32> to vector<1x1x32xf32>
    tpu.vector_store %arg5[%c0_16, %c0_17, %c0_18], %23 {strides = array<i32>} : memref<1x1x32xf32, #tpu.memory_space<vmem>>, vector<1x1x32xf32>,
    return
  }
  func.func @transform_0(%arg0: i32, %arg1: i32) -> (i32, i32, i32) {
    %c0_i32 = arith.constant 0 : i32
    %c0_i32_0 = arith.constant 0 : i32
    return %arg0, %arg1, %c0_i32 : i32, i32, i32
  }
  func.func @transform_1(%arg0: i32, %arg1: i32) -> (i32, i32) {
    %c0_i32 = arith.constant 0 : i32
    %c0_i32_0 = arith.constant 0 : i32
    %c0_i32_1 = arith.constant 0 : i32
    return %c0_i32, %c0_i32_0 : i32, i32
  }
  func.func @transform_2(%arg0: i32, %arg1: i32) -> (i32, i32, i32) {
    %c0_i32 = arith.constant 0 : i32
    %c0_i32_0 = arith.constant 0 : i32
    %c0_i32_1 = arith.constant 0 : i32
    return %arg0, %c0_i32, %c0_i32_0 : i32, i32, i32
  }
  func.func @transform_3(%arg0: i32, %arg1: i32) -> (i32, i32, i32) {
    %c0_i32 = arith.constant 0 : i32
    %c0_i32_0 = arith.constant 0 : i32
    %c0_i32_1 = arith.constant 0 : i32
    return %arg0, %c0_i32, %c0_i32_0 : i32, i32, i32
  }
}

</mosaic_0001>

<bundles_post_ra>
// kernel: tpu_custom_call.1
= control target key start
LH: loop header
LB: loop body
LE: loop exit
PB: predicated region body
PF: predicated region fallthrough
CT: control target
= control target key end

     0   :  { %9 = vsyncpa [#allocation3], 0  ;;  %s885_s0 = inlined_call_operand.vmem [shape: f32[2,31,4], index: 0, kind: input, shape index: {}]   ;;  %s886_s1 = inlined_call_operand.vmem [shape: f32[4,32], index: 1, kind: input, shape index: {}]   ;;  %s887_s2 = inlined_call_operand.hbm [shape: f32[2,1,32], index: 2, kind: output, shape index: {0}]   ;;  %s888_s3 = inlined_call_operand.hbm [shape: f32[2,1,32], index: 3, kind: output, shape index: {1}]  }
   0x1   :  { %11 = vsyncpa [#allocation3 + $0x1], 0 }
   0x2   :  { %12 = vsyncpa [#allocation5], 0 }
   0x3   :  { %14 = vsyncpa [#allocation5 + $0x1], 0  ;;  %s714_s12 = smov 0   ;;  %s716_s13 = smov 0  }
   0x4   :  { %s718_s14 = smov 0   ;;  %s720_s15 = smov 0  }
   0x5   :  { %s722_s16 = smov 0   ;;  %s724_s17 = smov 0  }
   0x6 LB: > { %s486_s18 = sadd.s32 4294967295, %s689_s17   ;;  %s487_s19 = sadd.s32 4294967294, %s689_s17   ;;  %s689_s17 = sphi %s724_s17, %s20_s17   ;;  %s685_s16 = sphi %s722_s16, %s895_s16   ;;  %s681_s15 = sphi %s720_s15, %s894_s15   ;;  %s677_s14 = sphi %s718_s14, %s893_s14   ;;  %s673_s13 = sphi %s716_s13, %s892_s13   ;;  %s669_s12 = sphi %s714_s12, %s891_s12  }
   0x7   : > { %s32_s20 = sadd.s32 1, %s685_s16  ;;  %s88_s21 = sadd.s32 1, %s677_s14 }
   0x8   : > { %p34_p0 = scmp.ge.s32.totalorder %s32_s20, 2  ;;  %p98_p1 = scmp.ne.s32.totalorder %s677_s14, %s673_s13 }
   0x9   : > { %p99_p2 = scmp.eq.s32.totalorder %s486_s18, 1  ;;  %p104_p3 = scmp.ne.s32.totalorder %s673_s13, %s669_s12 }
   0xa   : > { %s897_s20 = smov (%p34_p0, %s32_s20), 0  ;;  %p105_p5 = scmp.eq.s32.totalorder %s487_s19, 1 }
   0xb   : > { %p754_p4 = por %p99_p2, %p98_p1  ;;  %s85_s23 = ssub.s32 %s685_s16, %s897_s20 }
   0xc   : > { %p490_p6 = scmp.ge.s32.totalorder %s689_s17, 1  ;;  %p86_p7 = scmp.eq.s32.totalorder %s85_s23, 0 }
   0xd   : > { %p761_p8 = por %p105_p5, %p104_p3  ;;  %p165_p9 = scmp.lt.s32.totalorder %s689_s17, 3 }
   0xe   : > { %s767_s25 = scalar_select %p86_p7, %s677_s14, %s88_s21  }
   0xf   : > { %p166_p10 = pnand %p490_p6, %p165_p9 }
  0x10   : > { %v217_v0 = vld [vmem:[%s886_s1] sm:$0xf] (!%p166_p10)  ;;  %vm231_vm0 = vcmask (!%p166_p10), 1043456   ;;  %p197_p11 = scmp.lt.s32.totalorder (!%p166_p10), %s681_s15, 1  ;;  %vm218_vm1 = vcmask (!%p166_p10), 31744   ;;  %s778_s6 = sand.u32 (!%p166_p10), 1, %s673_s13  }
  0x11   : > { %169 = sbr.rel (%p166_p10) target bundleno = 301 (0x12d), region = 28  ;;  %508 = vmatprep.subr.msk.mxu0 (!%p166_p10), %vm231_vm0, %v217_v0  ;;  %516 = vmatprep.subr.msk.mxu1 (!%p166_p10), %vm231_vm0, %v217_v0  ;;  %vm210_vm2 = vcmask (!%p166_p10), 253952   ;;  %s781_s7 = scalar_lea.vmem (!%p166_p10), [#allocation2], %s778_s6  ;;  %v691_v5 = vmov (!%p166_p10), 0.0   ;;  %vm321_vm3 = vcmask (!%p166_p10), 261120   ;;  %vm327_vm4 = vcmask (!%p166_p10), 260096  }
  0x12   : > { %509 = vmatpush3.msk.msra.mxu0 (!%p166_p10), %vm231_vm0, %v217_v0  ;;  %517 = vmatpush3.msk.msra.mxu1 (!%p166_p10), %vm231_vm0, %v217_v0  ;;  %211 = vst.msk [vmem:[%s781_s7] sm:$0x1] (!%p166_p10), %vm210_vm2, %v691_v5  ;;  %s786_s8 = scalar_lea.vmem (!%p166_p10), [#allocation4], %s778_s6  ;;  %s498_s9 = sshll.u32 (!%p166_p10), %s681_s15, 4 }
  0x13   : > { %212 = vst.msk [vmem:[%s786_s8] sm:$0x1] (!%p166_p10), %vm210_vm2, %v691_v5  ;;  %s376_s10 = sshll.u32 (!%p166_p10), %s781_s7, 4  ;;  %s389_s11 = sshll.u32 (!%p166_p10), %s786_s8, 4  ;;  %s806_s10 = int_to_ptr.vmem [resolvable:$true] %s376_s10  ;;  %s815_s11 = int_to_ptr.vmem [resolvable:$true] %s389_s11 }
  0x14   : > { %s804_s21 = scalar_lea.hbm (!%p166_p10), %s887_s2, %s498_s9  ;;  %s813_s26 = scalar_lea.hbm (!%p166_p10), %s888_s3, %s498_s9 }
  0x15   : > { %s360_s27 = scalar_lea.sflag (!%p166_p10), [#allocation3], %s778_s6 }
  0x18   : > { %s198_s28 = scalar_select %p197_p11, %s681_s15, 1 }
  0x19   : > { %v320_v37 = vld [vmem:[%s781_s7] sm:$0x1] }
  0x1a   : > { %s502_s29 = sshll.u32 %s198_s28, 5  ;;  %v339_v40 = vld [vmem:[%s786_s8] sm:$0x1]  ;;  %s579_s28 = scalar_lea.vmem %s806_s10, 16 }
  0x1b   : > { %s204_s5 = scalar_lea.vmem %s885_s0, %s502_s29  ;;  %p580_p12 = scmp.ne.s32.totalorder %s806_s10, %s579_s28 }
  0x1c   : > { %v213_v1 = vld [vmem:[%s204_s5] sm:$0xff]  ;;  %v214_v2 = vld [vmem:[%s204_s5 + $0x8] sm:$0xff]  ;;  %v215_v3 = vld [vmem:[%s204_s5 + $0x10] sm:$0xff]  ;;  %s692_s29 = smov [#allocation2]  }
  0x1d   : > { %510 = vmatprep.mubr.msk.f32.mxu0 %vm218_vm1, %v213_v1  ;;  %513 = vmatprep.mubr.msk.f32.mxu1 %vm218_vm1, %v215_v3  ;;  %v216_v4 = vld [vmem:[%s204_s5 + $0x18] sm:$0x7f]  ;;  %p581_p13 = pnand %p580_p12, %p754_p4  ;;  %s583_s30 = sshll.u32 %s692_s29, 4  ;;  %s584_s30 = int_to_ptr.vmem [resolvable:$false] %s583_s30 }
  0x1e   : > { %511 = vmatmul.mubr.msk.f32.vlgmr.msra.gmra.mrb[0].mxu0 %vm218_vm1, %v214_v2  ;;  %514 = vmatmul.mubr.msk.f32.vlgmr.msra.gmra.mrb[0].mxu1 %vm218_vm1, %v216_v4  ;;  %s585_s4 = scalar_lea.vmem %s584_s30, 32  ;;  %p586_p1 = scmp.lt.s32.totalorder %s806_s10, %s584_s30 }
  0x1f   : > { %p582_p0 = pneg %p581_p13  ;;  %p587_p2 = scmp.lt.s32.totalorder %s585_s4, %s579_s28 }
  0x21   : > { %p588_p3 = por %p587_p2, %p586_p1 }
  0x23   : > { %p589_p5 = pnand %p588_p3, %p582_p0 }
  0xf1   : > { %v512_v6 = vpop.f32.mrb[0].mxu0  ;;  %v515_v7 = vpop.f32.mrb[0].mxu1 }
  0xf2   : > { %v323_v8 = vsel %vm321_vm3, %v512_v6, 0.0  ;;  %v341_v9 = vmul.f32 %v512_v6, %v512_v6  ;;  %v301_v10 = vpop.f32.mrb[1].mxu0  ;;  %v311_v11 = vpop.f32.mrb[1].mxu1  ;;  %v343_v19 = vmul.f32 %v515_v7, %v515_v7  ;;  %v328_v23 = vsel %vm327_vm4, %v515_v7, 0.0 }
  0xf3   : > { %v322_v12 = vsel %vm321_vm3, %v301_v10, 0.0  ;;  %v340_v13 = vmul.f32 %v301_v10, %v301_v10  ;;  %v325_v14 = vsel %vm321_vm3, %v311_v11, 0.0  ;;  %v342_v15 = vmul.f32 %v311_v11, %v311_v11 }
  0xf4   : > { %v345_v16 = vsel %vm321_vm3, %v341_v9, 0.0  ;;  %v324_v17 = vadd.f32 %v323_v8, %v322_v12  ;;  %v349_v26 = vsel %vm327_vm4, %v343_v19, 0.0 }
  0xf5   : > { %v344_v18 = vsel %vm321_vm3, %v340_v13, 0.0  ;;  %v347_v20 = vsel %vm321_vm3, %v342_v15, 0.0 }
  0xf6   : > { %v346_v21 = vadd.f32 %v345_v16, %v344_v18  ;;  %v326_v22 = vadd.f32 %v325_v14, %v324_v17 }
  0xf8   : > { %v329_v24 = vadd.f32 %v328_v23, %v326_v22  ;;  %v348_v25 = vadd.f32 %v347_v20, %v346_v21 }
  0xfa   : > { %v330_v27 = vrot.slane %v329_v24, 4  ;;  %v350_v28 = vadd.f32 %v349_v26, %v348_v25 }
  0xfc   : > { %v331_v29 = vadd.f32 %v330_v27, %v329_v24  ;;  %v351_v30 = vrot.slane %v350_v28, 4 }
  0xfe   : > { %v332_v31 = vrot.slane %v331_v29, 2  ;;  %v352_v32 = vadd.f32 %v351_v30, %v350_v28 }
 0x100   : > { %v333_v33 = vadd.f32 %v332_v31, %v331_v29  ;;  %v353_v34 = vrot.slane %v352_v32, 2 }
 0x102   : > { %v334_v35 = vrot.slane %v333_v33, 1  ;;  %v354_v36 = vadd.f32 %v353_v34, %v352_v32 }
 0x104   : > { %v335_v38 = vadd.f32 %v334_v35, %v333_v33  ;;  %v355_v39 = vrot.slane %v354_v36, 1 }
 0x106   : > { %v356_v41 = vadd.f32 %v355_v39, %v354_v36  ;;  %v336_v42 = vadd.f32 %v335_v38, %v320_v37 }
 0x108   : > { %338 = vst.msk [vmem:[%s781_s7] sm:$0x1] %vm210_vm2, %v336_v42  ;;  %v357_v43 = vadd.f32 %v356_v41, %v339_v40 }
 0x109   : > { %592 = shalt.err (!%p589_p5)
}
 0x10a   : > { %s593_s5 = scalar_lea.hbm %s804_s21, 16  ;;  %s597_s18 = scalar_lea.hbm %s887_s2, 32 }
 0x10b   : > { %p594_p6 = scmp.ne.s32.totalorder %s804_s21, %s593_s5  ;;  %p598_p10 = scmp.lt.u32.totalorder %s804_s21, %s887_s2 }
 0x10c   : > { %p599_p11 = scmp.lt.u32.totalorder %s597_s18, %s593_s5  ;;  %p601_p13 = scmp.lt.u32.totalorder %s593_s5, %s804_s21 }
 0x10d   : > { %p595_p7 = pnand %p594_p6, %p754_p4 }
 0x10e   : > { %p600_p12 = por %p599_p11, %p598_p10 }
 0x10f   : > { %p596_p9 = pneg %p595_p7 }
 0x110   : > { %p602_p0 = por %p601_p13, %p600_p12 }
 0x112   : > { %p603_p1 = pnand %p602_p0, %p596_p9 }
 0x114   : > { %606 = shalt.err (!%p603_p1)
}
 0x115   : > { %518 = dma.vmem_to_hbm [thread:$0]  (%p754_p4), %s806_s10, 16, %s804_s21, %s360_s27   ;;  %358 = vst.msk [vmem:[%s786_s8] sm:$0x1] %vm210_vm2, %v357_v43 }
 0x116   : > { %s364_s23 = scalar_lea.sflag [#allocation5], %s778_s6  ;;  %s607_s28 = scalar_lea.vmem %s815_s11, 16 }
 0x117   : > { %p608_p2 = scmp.ne.s32.totalorder %s815_s11, %s607_s28  ;;  %s693_s29 = smov [#allocation4]  }
 0x118   : > { %s611_s30 = sshll.u32 %s693_s29, 4  ;;  %s612_s30 = int_to_ptr.vmem [resolvable:$false] %s611_s30 }
 0x119   : > { %p609_p3 = pnand %p608_p2, %p754_p4  ;;  %s613_s4 = scalar_lea.vmem %s612_s30, 32 }
 0x11a   : > { %p614_p6 = scmp.lt.s32.totalorder %s815_s11, %s612_s30  ;;  %p615_p7 = scmp.lt.s32.totalorder %s613_s4, %s607_s28 }
 0x11b   : > { %p610_p5 = pneg %p609_p3 }
 0x11c   : > { %p616_p9 = por %p615_p7, %p614_p6 }
 0x11e   : > { %p617_p10 = pnand %p616_p9, %p610_p5 }
 0x120   : > { %620 = shalt.err (!%p617_p10)
}
 0x121   : > { %s621_s6 = scalar_lea.hbm %s813_s26, 16  ;;  %s625_s21 = scalar_lea.hbm %s888_s3, 32 }
 0x122   : > { %p622_p11 = scmp.ne.s32.totalorder %s813_s26, %s621_s6  ;;  %p626_p0 = scmp.lt.u32.totalorder %s813_s26, %s888_s3 }
 0x123   : > { %p627_p1 = scmp.lt.u32.totalorder %s625_s21, %s621_s6  ;;  %p629_p3 = scmp.lt.u32.totalorder %s621_s6, %s813_s26 }
 0x124   : > { %p623_p12 = pnand %p622_p11, %p754_p4 }
 0x125   : > { %p628_p2 = por %p627_p1, %p626_p0 }
 0x126   : > { %p624_p13 = pneg %p623_p12 }
 0x127   : > { %p630_p5 = por %p629_p3, %p628_p2 }
 0x129   : > { %p631_p6 = pnand %p630_p5, %p624_p13 }
 0x12b   : > { %634 = shalt.err (!%p631_p6)
}
 0x12c   : > { %519 = dma.vmem_to_hbm [thread:$0]  (%p754_p4), %s815_s11, 16, %s813_s26, %s364_s23  }
 0x12d PF: > { %p529_p7 = scmp.ge.s32.totalorder %s689_s17, 2  ;;  %s401_s7 = sand.u32 1, %s669_s12  }
 0x12e   : > { %s402_s9 = scalar_lea.sflag [#allocation3], %s401_s7 }
 0x12f   : > { %p523_p9 = pnand %p529_p7, %p761_p8 }
 0x131   : > { %660 = dma.done.wait (!%p523_p9), %s402_s9, 16  }
 0x132   : > { %662 = vsyncadd (!%p523_p9), %s402_s9, 4294967280  ;;  %s410_s18 = scalar_lea.sflag [#allocation5], %s401_s7 }
 0x133   : > { %664 = dma.done.wait (!%p523_p9), %s410_s18, 16  }
 0x134   : > { %666 = vsyncadd (!%p523_p9), %s410_s18, 4294967280  ;;  %s20_s17 = sadd.s32 1, %s689_s17   ;;  %s891_s12 = smov %s673_s13 }
 0x135   : > { %p17_p10 = scmp.ge.s32.totalorder %s20_s17, 4   ;;  %s892_s13 = smov %s677_s14 }
 0x136   : > { %s893_s14 = smov %s767_s25  ;;  %s894_s15 = smov %s685_s16 }
 0x137   : > { %s895_s16 = smov %s897_s20  ;;  %19 = sbr.rel (!%p17_p10) target bundleno = 6 (0x6), region = 84 }
 0x13e   :  { %414 = vsyncpa [#allocation3], 1 }
 0x13f   :  { %416 = vsyncpa [#allocation3 + $0x1], 1 }
 0x140   :  { %417 = vsyncpa [#allocation5], 1 }
 0x141   :  { %419 = vsyncpa [#allocation5 + $0x1], 1 }

</bundles_post_ra>
